<compile_context>
chip_gen: v7x
topology: tpu7x:2x2x1
jax: 0.10.0
libtpu: 0.0.40
codegen_flags: <defaults>
</compile_context>

<pallas_src>
import math

import numpy as np
import jax
import jax.numpy as jnp
from jax.experimental import pallas as pl
from jax.experimental.pallas import tpu as pltpu


# ----------------------------------------------------------------------------
# Parameter / buffer setup (glue, plain JAX) — mirrors nn.Module.__init__
# ----------------------------------------------------------------------------
def make_positional_encoding(max_len: int, d_model: int, dtype=jnp.float32):
    """Builds the `pe` buffer exactly like the PyTorch module: shape (1, max_len, d_model)."""
    position = jnp.arange(max_len, dtype=jnp.float32)[:, None]                      # (max_len, 1)
    div_term = jnp.exp(jnp.arange(0, d_model, 2, dtype=jnp.float32)
                       * (-math.log(10000.0) / d_model))                            # (d_model/2,)
    angles = position * div_term                                                     # (max_len, d_model/2)
    pe = jnp.zeros((max_len, d_model), dtype=jnp.float32)
    pe = pe.at[:, 0::2].set(jnp.sin(angles))
    pe = pe.at[:, 1::2].set(jnp.cos(angles))
    return pe[None].astype(dtype)                                                    # (1, max_len, d_model)


# ----------------------------------------------------------------------------
# Kernels (elementwise hot path: add positional encoding + dropout)
# ----------------------------------------------------------------------------
def _pe_add_kernel_eval(x_ref, pe_ref, o_ref):
    # eval-mode forward: dropout is identity; pe block (1, TS, Dv) broadcasts over batch
    o_ref[...] = (x_ref[...] + pe_ref[...]).astype(o_ref.dtype)


_GOLDEN = np.uint32(0x9E3779B1)
_MIX1 = np.uint32(0x85EBCA6B)
_MIX2 = np.uint32(0xC2B2AE35)


def _make_pe_add_kernel_train(p: float, seq_folded: int):
    keep_scale = np.float32(1.0 / (1.0 - p))
    # uint32 threshold: drop an element if its hashed bits fall below p * 2^32.
    thresh = np.uint32(min(int(round(p * 2.0 ** 32)), 2 ** 32 - 1))
    s_total = int(seq_folded)

    def kernel(seed_ref, x_ref, pe_ref, o_ref):
        y = x_ref[...] + pe_ref[...]
        tb, ts, dv = y.shape                       # static block shape
        # Global (tiling-invariant) element index -> identical dropout mask for any tiling.
        b0 = pl.program_id(1) * tb
        s0 = pl.program_id(0) * ts
        bi = jax.lax.broadcasted_iota(jnp.int32, y.shape, 0) + b0
        si = jax.lax.broadcasted_iota(jnp.int32, y.shape, 1) + s0
        di = jax.lax.broadcasted_iota(jnp.int32, y.shape, 2)
        gidx = (bi * s_total + si) * dv + di       # int32, wrap-around is harmless
        # Counter-based hash (murmur3 fmix32) keyed on the SMEM seed.
        h = gidx.astype(jnp.uint32) ^ (seed_ref[0].astype(jnp.uint32) * _GOLDEN)
        h = h ^ (h >> 16)
        h = h * _MIX1
        h = h ^ (h >> 13)
        h = h * _MIX2
        h = h ^ (h >> 16)
        keep = h >= thresh                         # drop with probability p
        o_ref[...] = jnp.where(keep, y * keep_scale, jnp.zeros_like(y)).astype(o_ref.dtype)

    return kernel


# ----------------------------------------------------------------------------
# Wrapper
# ----------------------------------------------------------------------------
def positional_encoding_forward(x, pe, *, p: float = 0.1, training: bool = False,
                                seed: int = 0, seq_tile: int | None = None):
    """
    x:  (B, S, D)
    pe: (1, max_len, D), max_len >= S
    Returns (B, S, D): dropout(x + pe[:, :S])  (dropout only when training=True)
    """
    B, S, D = x.shape
    assert pe.shape[1] >= S, "pe buffer shorter than sequence"
    assert pe.shape[2] == D

    # Slice + cast pe once (no f32->bf16 promote/downcast per element inside the kernel).
    pe_use = pe[:, :S, :].astype(x.dtype)

    # ---- lane-dense folding: pack f consecutive seq positions into the lane dim ----
    f = 1
    if D < 128 and 128 % D == 0:
        cand = 128 // D
        if S % cand == 0:
            f = cand
    S_f, Dv = S // f, D * f
    x_in = x.reshape(B, S_f, Dv)
    pe_in = pe_use.reshape(1, S_f, Dv)

    itemsize = x.dtype.itemsize
    row_bytes = Dv * itemsize
    budget = 4 << 20                               # target bytes per x/out tile

    # ---- choose (TB, TS): whole batch in the block when it fits, seq tiled to ~4 MiB ----
    TB = B
    if seq_tile is not None and seq_tile > 0:
        TS = min(int(seq_tile), S_f)
        if TS != S_f and TS % 8 != 0:
            TS = max(8, (TS // 8) * 8)
    elif S_f <= 8:
        TS = S_f
    else:
        cap = budget // max(1, TB * row_bytes)
        if cap < 8:
            TS = 8
            TB = max(1, min(B, budget // max(1, TS * row_bytes)))
        else:
            TS = min(S_f, max(8, (cap // 8) * 8))
            # keep >= 2 seq steps when it costs nothing (v7x megacore sharding)
            if TS >= S_f and S_f >= 16:
                half = ((((S_f + 1) // 2) + 7) // 8) * 8
                TS = max(8, min(TS, half))
    TS = min(TS, S_f)
    assert TS == S_f or TS % 8 == 0

    nS = pl.cdiv(S_f, TS)
    nB = pl.cdiv(B, TB)
    grid = (nS, nB)                                # batch innermost -> pe tile stays resident

    x_spec = pl.BlockSpec((TB, TS, Dv), lambda s, b, *_: (b, s, 0))
    pe_spec = pl.BlockSpec((1, TS, Dv), lambda s, b, *_: (0, s, 0))   # independent of b
    out_spec = pl.BlockSpec((TB, TS, Dv), lambda s, b, *_: (b, s, 0))
    out_shape = jax.ShapeDtypeStruct((B, S_f, Dv), x.dtype)

    # Explicit VMEM budget: double-buffered x + out + pe tiles, plus headroom.
    tile_bytes = TB * TS * Dv * itemsize
    pe_tile_bytes = TS * Dv * itemsize
    vmem_needed = 2 * (2 * tile_bytes + pe_tile_bytes) + (2 << 20)
    vmem_limit = int(max(vmem_needed, 16 << 20))
    vmem_limit = int(min(vmem_limit, max(40 << 20, vmem_needed)))   # ~40 MiB cap, v7x-safe

    cparams = pltpu.CompilerParams(
        dimension_semantics=("parallel", "parallel"),
        vmem_limit_bytes=vmem_limit,
    )
    cost = pl.CostEstimate(
        flops=B * S * D,
        transcendentals=0,
        bytes_accessed=(2 * B * S * D + S * D) * itemsize,
    )

    if (not training) or p <= 0.0:
        out = pl.pallas_call(
            _pe_add_kernel_eval,
            out_shape=out_shape,
            grid_spec=pltpu.PrefetchScalarGridSpec(
                num_scalar_prefetch=0,
                grid=grid,
                in_specs=[x_spec, pe_spec],
                out_specs=out_spec,
            ),
            compiler_params=cparams,
            cost_estimate=cost,
        )(x_in, pe_in)
    else:
        seed_arr = jnp.asarray([seed], dtype=jnp.int32)
        out = pl.pallas_call(
            _make_pe_add_kernel_train(p, S_f),
            out_shape=out_shape,
            grid_spec=pltpu.PrefetchScalarGridSpec(
                num_scalar_prefetch=1,            # seed lands in SMEM, passed first to the kernel
                grid=grid,
                in_specs=[x_spec, pe_spec],
                out_specs=out_spec,
            ),
            compiler_params=cparams,
            cost_estimate=cost,
        )(seed_arr, x_in, pe_in)

    return out.reshape(B, S, D)


# ----------------------------------------------------------------------------
# Demo / smoke test
# ----------------------------------------------------------------------------
if __name__ == "__main__":
    B, S, D = 2, 32, 64       # d_model=64 matches the module default
    MAX_LEN = 64              # module default is 5000; smaller here, semantics identical for S <= max_len
    P_DROP = 0.1

    key = jax.random.PRNGKey(0)
    x = jax.random.normal(key, (B, S, D), dtype=jnp.float32)
    pe = make_positional_encoding(MAX_LEN, D)
    ref = x + pe[:, :S, :]

    # eval mode (dropout == identity): exact semantics vs pure-JAX reference
    out_eval = positional_encoding_forward(x, pe, p=P_DROP, training=False)
    out_eval = jax.block_until_ready(out_eval)
    assert out_eval.shape == (B, S, D)
    assert jnp.allclose(out_eval, ref, atol=1e-6), "eval-mode mismatch"

    # training mode: dropout applied inside the kernel with a counter-based hash RNG.
    out_train = positional_encoding_forward(x, pe, p=P_DROP, training=True, seed=1234)
    out_train = jax.block_until_ready(out_train)
    assert out_train.shape == (B, S, D)
    # every element is either (exactly) dropped to 0 or scaled by 1/(1-p)
    scaled = ref / (1.0 - P_DROP)
    ok = jnp.isclose(out_train, 0.0, atol=1e-6) | jnp.isclose(out_train, scaled, rtol=1e-5, atol=1e-5)
    assert bool(jnp.all(ok)), "training-mode values are neither dropped nor correctly scaled"
    drop_frac = float(jnp.mean(jnp.isclose(out_train, 0.0, atol=1e-6).astype(jnp.float32)))
    assert 0.01 < drop_frac < 0.3, f"implausible drop fraction {drop_frac} for p={P_DROP}"

    # dropout mask is tiling-invariant: a different seq_tile must give the identical result
    out_train_b = positional_encoding_forward(x, pe, p=P_DROP, training=True, seed=1234, seq_tile=16)
    out_train_b = jax.block_until_ready(out_train_b)
    assert bool(jnp.array_equal(out_train, out_train_b)), "dropout mask depends on tiling"

    print("KERNEL_OK")
</pallas_src>

<mosaic_0001>
module attributes {stable_mosaic.version = 11 : i64} {
  func.func @_pe_add_kernel_eval(%arg0: i32, %arg1: i32, %arg2: memref<2x8x128xf32, #tpu.memory_space<vmem>>, %arg3: memref<1x8x128xf32, #tpu.memory_space<vmem>>, %arg4: memref<2x8x128xf32, #tpu.memory_space<vmem>>) attributes {dimension_semantics = [#tpu.dimension_semantics<parallel>, #tpu.dimension_semantics<parallel>], iteration_bounds = array<i64: 2, 1>, scalar_prefetch = 0 : i64, scratch_operands = 0 : i64, tpu.core_type = #tpu.core_type<tc>, window_params = [{transform_indices = @transform_0, window_bounds = array<i64: 2, 8, 128>}, {transform_indices = @transform_1, window_bounds = array<i64: 1, 8, 128>}, {transform_indices = @transform_2, window_bounds = array<i64: 2, 8, 128>}]} {
    %c0 = arith.constant 0 : index
    %c0_0 = arith.constant 0 : index
    %c0_1 = arith.constant 0 : index
    %0 = vector.load %arg2[%c0, %c0_0, %c0_1] : memref<2x8x128xf32, #tpu.memory_space<vmem>>, vector<2x8x128xf32>
    %c0_2 = arith.constant 0 : index
    %c0_3 = arith.constant 0 : index
    %c0_4 = arith.constant 0 : index
    %1 = vector.load %arg3[%c0_2, %c0_3, %c0_4] : memref<1x8x128xf32, #tpu.memory_space<vmem>>, vector<1x8x128xf32>
    %2 = vector.broadcast %1 : vector<1x8x128xf32> to vector<2x8x128xf32>
    %3 = arith.addf %0, %2 : vector<2x8x128xf32>
    %c0_5 = arith.constant 0 : index
    %c0_6 = arith.constant 0 : index
    %c0_7 = arith.constant 0 : index
    %4 = vector.load %arg4[%c0_5, %c0_6, %c0_7] : memref<2x8x128xf32, #tpu.memory_space<vmem>>, vector<2x8x128xf32>
    tpu.vector_store %arg4[%c0_5, %c0_6, %c0_7], %3 {strides = array<i32>} : memref<2x8x128xf32, #tpu.memory_space<vmem>>, vector<2x8x128xf32>,
    return
  }
  func.func @transform_0(%arg0: i32, %arg1: i32) -> (i32, i32, i32) {
    %c0_i32 = arith.constant 0 : i32
    %c0_i32_0 = arith.constant 0 : i32
    return %arg1, %arg0, %c0_i32 : i32, i32, i32
  }
  func.func @transform_1(%arg0: i32, %arg1: i32) -> (i32, i32, i32) {
    %c0_i32 = arith.constant 0 : i32
    %c0_i32_0 = arith.constant 0 : i32
    %c0_i32_1 = arith.constant 0 : i32
    return %c0_i32, %arg0, %c0_i32_0 : i32, i32, i32
  }
  func.func @transform_2(%arg0: i32, %arg1: i32) -> (i32, i32, i32) {
    %c0_i32 = arith.constant 0 : i32
    %c0_i32_0 = arith.constant 0 : i32
    return %arg1, %arg0, %c0_i32 : i32, i32, i32
  }
}

</mosaic_0001>

<bundles_post_ra>
// kernel: tpu_custom_call.1
= control target key start
LH: loop header
LB: loop body
LE: loop exit
PB: predicated region body
PF: predicated region fallthrough
CT: control target
= control target key end

     0   :  { %7 = vsyncpa [#allocation3], 0  ;;  %s829_s0 = inlined_call_operand.hbm [shape: f32[2,16,128], index: 0, kind: input, shape index: {}]   ;;  %s830_s1 = inlined_call_operand.hbm [shape: f32[1,16,128], index: 1, kind: input, shape index: {}]   ;;  %s831_s2 = inlined_call_operand.hbm [shape: f32[2,16,128], index: 2, kind: output, shape index: {}]  }
   0x1   :  { %9 = vsyncpa [#allocation3 + $0x1], 0 }
   0x2   :  { %10 = vsyncpa [#allocation6], 0 }
   0x3   :  { %12 = vsyncpa [#allocation6 + $0x1], 0 }
   0x4   :  { %13 = vsyncpa [#allocation4], 0 }
   0x5   :  { %15 = vsyncpa [#allocation4 + $0x1], 0  ;;  %s611_s9 = smov 0   ;;  %s613_s10 = smov 0  }
   0x6   :  { %s615_s11 = smov 0   ;;  %s617_s12 = smov 0  }
   0x7   :  { %s619_s13 = smov 0   ;;  %s621_s14 = smov 0  }
   0x8 LB: > { %s350_s15 = sadd.s32 4294967295, %s585_s14   ;;  %s351_s16 = sadd.s32 4294967294, %s585_s14   ;;  %s585_s14 = sphi %s621_s14, %s21_s14   ;;  %s581_s13 = sphi %s619_s13, %s849_s13   ;;  %s577_s12 = sphi %s617_s12, %s848_s12   ;;  %s573_s11 = sphi %s615_s11, %s847_s11   ;;  %s569_s10 = sphi %s613_s10, %s846_s10   ;;  %s565_s9 = sphi %s611_s9, %s845_s9  }
   0x9   : > { %s33_s17 = sadd.s32 1, %s581_s13  ;;  %s42_s18 = sadd.s32 1, %s573_s11 }
   0xa   : > { %p35_p0 = scmp.ge.s32.totalorder %s33_s17, 2  ;;  %p49_p1 = scmp.ne.s32.totalorder %s573_s11, %s569_s10 }
   0xb   : > { %p50_p2 = scmp.eq.s32.totalorder %s585_s14, 0  ;;  %p55_p3 = scmp.ne.s32.totalorder %s569_s10, %s565_s9 }
   0xc   : > { %s851_s17 = smov (%p35_p0, %s33_s17), 0  ;;  %p56_p5 = scmp.eq.s32.totalorder %s350_s15, 0 }
   0xd   : > { %p652_p4 = por %p50_p2, %p49_p1  ;;  %s38_s20 = ssub.s32 %s581_s13, %s851_s17 }
   0xe   : > { %p107_p6 = scmp.eq.s32.totalorder %s350_s15, 1  ;;  %p40_p7 = scmp.eq.s32.totalorder %s38_s20, 0 }
   0xf   : > { %p658_p8 = por %p56_p5, %p55_p3  ;;  %p113_p10 = scmp.eq.s32.totalorder %s351_s16, 1 }
  0x10   : > { %p662_p9 = por %p107_p6, %p49_p1  ;;  %p383_p13 = scmp.lt.s32.totalorder %s585_s14, 2 }
  0x11   : > { %s835_s21 = scalar_select %p658_p8, 1, 0 }
  0x12   : > { %s836_s22 = scalar_select %p662_p9, 1, 0 }
  0x13   : > { %s667_s23 = scalar_select %p40_p7, %s573_s11, %s42_s18  }
  0x14   : > { %p669_p11 = por %p113_p10, %p55_p3  ;;  %s676_s25 = sand.u32 1, %s573_s11  }
  0x15   : > { %s354_s26 = sshll.u32 %s676_s25, 4  ;;  %s355_s27 = sshll.u32 %s581_s13, 7 }
  0x16   : > { %s837_s24 = scalar_select %p669_p11, 1, 0 }
  0x17   : > { %s685_s30 = scalar_lea.hbm %s829_s0, %s355_s27  ;;  %s137_s3 = scalar_lea.vmem [#allocation2], %s354_s26 }
  0x18   : > { %s146_s4 = sshll.u32 %s137_s3, 4  ;;  %p691_p0 = pnand %p383_p13, %p652_p4  ;;  %s687_s4 = int_to_ptr.vmem [resolvable:$true] %s146_s4 }
  0x19   : > { %s134_s6 = scalar_lea.sflag [#allocation3], %s676_s25  ;;  %s439_s7 = scalar_lea.hbm %s685_s30, 256 }
  0x1a   : > { %p440_p1 = scmp.ne.s32.totalorder %s685_s30, %s439_s7  ;;  %p441_p2 = pneg %p691_p0 }
  0x1b   : > { %s444_s16 = scalar_lea.hbm %s829_s0, 512  ;;  %p445_p4 = scmp.lt.u32.totalorder %s685_s30, %s829_s0 }
  0x1c   : > { %p442_p3 = pnand %p441_p2, %p440_p1  ;;  %p446_p6 = scmp.lt.u32.totalorder %s444_s16, %s439_s7 }
  0x1d   : > { %p448_p10 = scmp.lt.u32.totalorder %s439_s7, %s685_s30 }
  0x1e   : > { %p443_p5 = pneg %p442_p3  ;;  %p447_p7 = por %p446_p6, %p445_p4 }
  0x20   : > { %p449_p13 = por %p448_p10, %p447_p7 }
  0x22   : > { %p450_p12 = pnand %p449_p13, %p443_p5 }
  0x24   : > { %453 = shalt.err (!%p450_p12)
}
  0x25   : > { %s454_s20 = scalar_lea.vmem %s687_s4, 256  ;;  %s587_s26 = smov [#allocation2]  }
  0x26   : > { %p455_p1 = scmp.ne.s32.totalorder %s687_s4, %s454_s20  ;;  %s459_s28 = sshll.u32 %s587_s26, 4  ;;  %s460_s28 = int_to_ptr.vmem [resolvable:$false] %s459_s28 }
  0x27   : > { %s461_s29 = scalar_lea.vmem %s460_s28, 512  ;;  %p462_p9 = scmp.lt.s32.totalorder %s687_s4, %s460_s28 }
  0x28   : > { %p457_p3 = pnand %p455_p1, %p441_p2  ;;  %p463_p4 = scmp.lt.s32.totalorder %s461_s29, %s454_s20 }
  0x2a   : > { %p458_p11 = pneg %p457_p3  ;;  %p464_p6 = por %p463_p4, %p462_p9 }
  0x2c   : > { %p465_p7 = pnand %p464_p6, %p458_p11 }
  0x2e   : > { %468 = shalt.err (!%p465_p7)
}
  0x2f   : > { %s588_s3 = smov 256   ;;  %s589_s7 = smov 128  }
  0x30   : > { %s590_s8 = smov 8   ;;  %p358_p12 = scmp.ge.s32.totalorder %s585_s14, 1 }
  0x31   : > { %375 = dma.hbm_to_vmem [thread:$0]  (!%p691_p0), %s685_s30, 256, %s687_s4, %s134_s6, %s588_s3, %s589_s7, %s590_s8  }
  0x32   : > { %p172_p9 = scmp.lt.s32.totalorder %s585_s14, 3  ;;  %s356_s15 = sshll.u32 %s676_s25, 3 }
  0x33   : > { %s735_s20 = scalar_lea.hbm %s830_s1, %s355_s27  ;;  %s160_s26 = scalar_lea.vmem [#allocation5], %s356_s15 }
  0x34   : > { %p726_p11 = pnand %p358_p12, %p172_p9  ;;  %s167_s28 = sshll.u32 %s160_s26, 4  ;;  %s168_s28 = int_to_ptr.vmem [resolvable:$true] %s167_s28 }
  0x35   : > { %s157_s30 = scalar_lea.sflag [#allocation6], %s676_s25  ;;  %s469_s4 = scalar_lea.hbm %s735_s20, 128 }
  0x36   : > { %s839_s16 = scalar_select %p726_p11, 1, 0 }
  0x37   : > { %p470_p5 = scmp.ne.s32.totalorder %s735_s20, %s469_s4  ;;  %s474_s3 = scalar_lea.hbm %s830_s1, 256 }
  0x38   : > { %p475_p1 = scmp.lt.u32.totalorder %s735_s20, %s830_s1  ;;  %p476_p3 = scmp.lt.u32.totalorder %s474_s3, %s469_s4 }
  0x39   : > { %p472_p10 = pnand %p470_p5, %p441_p2  ;;  %p478_p6 = scmp.lt.u32.totalorder %s469_s4, %s735_s20 }
  0x3a   : > { %p477_p4 = por %p476_p3, %p475_p1 }
  0x3b   : > { %p473_p13 = pneg %p472_p10 }
  0x3c   : > { %p479_p7 = por %p478_p6, %p477_p4 }
  0x3e   : > { %p480_p12 = pnand %p479_p7, %p473_p13 }
  0x40   : > { %483 = shalt.err (!%p480_p12)
}
  0x41   : > { %s484_s25 = scalar_lea.vmem %s168_s28, 128  ;;  %s591_s8 = smov [#allocation5]  }
  0x42   : > { %p485_p9 = scmp.ne.s32.totalorder %s168_s28, %s484_s25  ;;  %s489_s15 = sshll.u32 %s591_s8, 4  ;;  %s490_s15 = int_to_ptr.vmem [resolvable:$false] %s489_s15 }
  0x43   : > { %s491_s18 = scalar_lea.vmem %s490_s15, 256  ;;  %p492_p8 = scmp.lt.s32.totalorder %s168_s28, %s490_s15 }
  0x44   : > { %p487_p5 = pnand %p485_p9, %p441_p2  ;;  %p493_p11 = scmp.lt.s32.totalorder %s491_s18, %s484_s25 }
  0x46   : > { %p488_p10 = pneg %p487_p5  ;;  %p494_p1 = por %p493_p11, %p492_p8 }
  0x48   : > { %p495_p3 = pnand %p494_p1, %p488_p10 }
  0x4a   : > { %498 = shalt.err (!%p495_p3)
}
  0x4b   : > { %378 = dma.hbm_to_vmem [thread:$0]  (!%p691_p0), %s735_s20, 128, %s168_s28, %s157_s30  }
  0x4c   : > { %p840_p13 = scmp.ne.s32.totalorder %s839_s16, 0 }
  0x4d   : > { %s760_s19 = sand.u32 (!%p840_p13), 1, %s569_s10   ;;  %p841_p2 = scmp.ne.s32.totalorder (!%p840_p13), %s835_s21, 0 }
  0x4e   : > { %176 = sbr.rel (%p840_p13) target bundleno = 117 (0x75), region = 28  ;;  %s359_s26 = sshll.u32 (!%p840_p13), %s760_s19, 4 }
  0x4f   : > { %s179_s4 = scalar_lea.sflag (!%p840_p13), [#allocation3], %s760_s19  ;;  %s182_s6 = scalar_lea.vmem (!%p840_p13), [#allocation2], %s359_s26 }
  0x55   : > { %552 = dma.done.wait (%p841_p2), %s179_s4, 256  }
  0x56   : > { %554 = vsyncadd (%p841_p2), %s179_s4, 4294967040  ;;  %s360_s5 = sshll.u32 %s760_s19, 3  ;;  %s188_s16 = scalar_lea.sflag [#allocation6], %s760_s19 }
  0x57   : > { %s191_s20 = scalar_lea.vmem [#allocation5], %s360_s5 }
  0x58   : > { %556 = dma.done.wait (%p841_p2), %s188_s16, 128  }
  0x59   : > { %558 = vsyncadd (%p841_p2), %s188_s16, 4294967168  ;;  %s216_s28 = scalar_lea.vmem [#allocation7], %s359_s26  ;;  %s363_s29 = sshll.u32 %s577_s12, 7  ;;  %v219_v0 = vld [vmem:[%s182_s6] sm:$0xff]  ;;  %v220_v2 = vld [vmem:[%s182_s6 + $0x8] sm:$0xff] }
  0x5a   : > { %s242_s30 = sshll.u32 %s216_s28, 4  ;;  %v221_v1 = vld [vmem:[%s191_s20] sm:$0xff]  ;;  %s780_s7 = scalar_lea.hbm %s831_s2, %s363_s29  ;;  %s775_s30 = int_to_ptr.vmem [resolvable:$true] %s242_s30 }
  0x5b   : > { %v222_v3 = vadd.f32 %v221_v1, %v219_v0  ;;  %v223_v4 = vadd.f32 %v221_v1, %v220_v2  ;;  %s227_s21 = scalar_lea.sflag [#allocation4], %s760_s19  ;;  %s499_s25 = scalar_lea.vmem %s775_s30, 256 }
  0x5c   : > { %p500_p8 = scmp.ne.s32.totalorder %s775_s30, %s499_s25  ;;  %p842_p0 = scmp.ne.s32.totalorder %s836_s22, 0 }
  0x5d   : > { %224 = vst [vmem:[%s216_s28] sm:$0xff] %v222_v3  ;;  %225 = vst [vmem:[%s216_s28 + $0x8] sm:$0xff] %v223_v4  ;;  %s592_s12 = smov [#allocation7]  }
  0x5e   : > { %p501_p11 = pnand %p500_p8, %p842_p0  ;;  %s503_s8 = sshll.u32 %s592_s12, 4  ;;  %s504_s8 = int_to_ptr.vmem [resolvable:$false] %s503_s8 }
  0x5f   : > { %s505_s15 = scalar_lea.vmem %s504_s8, 512  ;;  %p506_p6 = scmp.lt.s32.totalorder %s775_s30, %s504_s8 }
  0x60   : > { %p502_p4 = pneg %p501_p11  ;;  %p507_p7 = scmp.lt.s32.totalorder %s505_s15, %s499_s25 }
  0x62   : > { %p508_p12 = por %p507_p7, %p506_p6 }
  0x64   : > { %p509_p9 = pnand %p508_p12, %p502_p4 }
  0x66   : > { %512 = shalt.err (!%p509_p9)
}
  0x67   : > { %s513_s18 = scalar_lea.hbm %s780_s7, 256  ;;  %s517_s6 = scalar_lea.hbm %s831_s2, 512 }
  0x68   : > { %p514_p5 = scmp.ne.s32.totalorder %s780_s7, %s513_s18  ;;  %p518_p3 = scmp.lt.u32.totalorder %s780_s7, %s831_s2 }
  0x69   : > { %p519_p13 = scmp.lt.u32.totalorder %s517_s6, %s513_s18  ;;  %p521_p8 = scmp.lt.u32.totalorder %s513_s18, %s780_s7 }
  0x6a   : > { %p515_p10 = pnand %p514_p5, %p842_p0 }
  0x6b   : > { %p520_p2 = por %p519_p13, %p518_p3 }
  0x6c   : > { %p516_p1 = pneg %p515_p10 }
  0x6d   : > { %p522_p11 = por %p521_p8, %p520_p2 }
  0x6f   : > { %p523_p4 = pnand %p522_p11, %p516_p1 }
  0x71   : > { %526 = shalt.err (!%p523_p4)
}
  0x72   : > { %s593_s20 = smov 128   ;;  %s594_s28 = smov 256  }
  0x73   : > { %s595_s29 = smov 8  }
  0x74   : > { %370 = dma.vmem_to_hbm [thread:$0]  (%p842_p0), %s775_s30, 256, %s780_s7, %s227_s21, %s593_s20, %s594_s28, %s595_s29  }
  0x75 PF: > { %s257_s3 = sand.u32 1, %s565_s9   ;;  %p843_p6 = scmp.ne.s32.totalorder %s837_s24, 0 }
  0x76   : > { %p844_p7 = scmp.ge.s32.totalorder %s585_s14, 2  ;;  %s258_s27 = scalar_lea.sflag [#allocation4], %s257_s3 }
  0x78   : > { %p380_p12 = pnand %p844_p7, %p843_p6 }
  0x7a   : > { %560 = dma.done.wait (!%p380_p12), %s258_s27, 256  }
  0x7b   : > { %562 = vsyncadd (!%p380_p12), %s258_s27, 4294967040  ;;  %s21_s14 = sadd.s32 1, %s585_s14   ;;  %s845_s9 = smov %s569_s10 }
  0x7c   : > { %p18_p9 = scmp.ge.s32.totalorder %s21_s14, 4   ;;  %s846_s10 = smov %s573_s11 }
  0x7d   : > { %s847_s11 = smov %s667_s23  ;;  %s848_s12 = smov %s581_s13 }
  0x7e   : > { %s849_s13 = smov %s851_s17  ;;  %20 = sbr.rel (!%p18_p9) target bundleno = 8 (0x8), region = 86 }
  0x85   :  { %263 = vsyncpa [#allocation3], 1 }
  0x86   :  { %265 = vsyncpa [#allocation3 + $0x1], 1 }
  0x87   :  { %266 = vsyncpa [#allocation6], 1 }
  0x88   :  { %268 = vsyncpa [#allocation6 + $0x1], 1 }
  0x89   :  { %269 = vsyncpa [#allocation4], 1 }
  0x8a   :  { %271 = vsyncpa [#allocation4 + $0x1], 1 }

</bundles_post_ra>
